<compile_context>
chip_gen: v7x
topology: tpu7x:2x2x1
jax: 0.10.0
libtpu: 0.0.40
codegen_flags: <defaults>
</compile_context>

<pallas_src>
import jax
import jax.numpy as jnp
from jax.experimental import pallas as pl
from jax.experimental.pallas import tpu as pltpu

# ---- model dimensions (MLP AE encoder + FC classifier) ----
BATCH      = 8
D_IN       = 64
ENC_HIDDEN = 32
LATENT     = 16
CLS_HIDDEN = 32
N_CLASSES  = 4

LANES = 128                                         # vreg lane width / MXU tile
_W_OFF  = (0, D_IN, D_IN + LANES, D_IN + 2 * LANES)  # row offsets in weight slab
_W_ROWS = (D_IN, LANES, LANES, LANES)                # contraction rows per layer
W_SLAB_ROWS = D_IN + 3 * LANES                       # 448
B_SLAB_ROWS = 8


def _round_up(n, m):
    return (n + m - 1) // m * m


def _aefc_kernel(x_ref, w_ref, b_ref, out_ref):
    """One batch tile: 4 lane-padded (…,128) matmuls + biases + 2 ReLUs."""
    cd = w_ref.dtype            # matmul operand dtype (f32 or bf16)

    def layer(h, idx, relu):
        r0 = _W_OFF[idx]
        w = w_ref[r0:r0 + _W_ROWS[idx], :]                      # static slice of slab
        acc = jnp.dot(h, w, preferred_element_type=jnp.float32)  # f32 accumulation
        acc = acc + b_ref[idx:idx + 1, :]                        # bias add in f32
        if relu:
            acc = jnp.maximum(acc, 0.0)                          # ReLU in f32
        return acc

    h1     = layer(x_ref[...], 0, relu=True).astype(cd)   # encoder L1
    z      = layer(h1,          1, relu=False).astype(cd) # encoder L2 (latent)
    h2     = layer(z,           2, relu=True).astype(cd)  # classifier L1
    logits = layer(h2,          3, relu=False)            # classifier L2 (logits)
    out_ref[...] = logits.astype(out_ref.dtype)            # (TB, 128) lane-dense store


def pack_params(params, compute_dtype=jnp.float32):
    """Zero-pad and pack the 8 nn.Linear params into 2 lane-aligned slabs."""
    w1, b1, w2, b2, w3, b3, w4, b4 = params
    ws = (w1, w2, w3, w4)
    bs = (b1, b2, b3, b4)

    w_slab = jnp.zeros((W_SLAB_ROWS, LANES), compute_dtype)
    for i, w in enumerate(ws):
        r0 = _W_OFF[i]
        w_slab = w_slab.at[r0:r0 + w.shape[0], :w.shape[1]].set(w.astype(compute_dtype))

    b_slab = jnp.zeros((B_SLAB_ROWS, LANES), jnp.float32)
    for i, b in enumerate(bs):
        b = jnp.reshape(b, (-1,)).astype(jnp.float32)
        b_slab = b_slab.at[i, :b.shape[0]].set(b)
    return w_slab, b_slab


def aefc_classify(x, params, compute_dtype=jnp.float32):
    """Fused encoder + classifier forward. x: (B, D_IN)."""
    w_slab, b_slab = pack_params(params, compute_dtype)

    B = x.shape[0]
    Bp8 = _round_up(max(B, 1), 8)
    TB = min(Bp8, 256)                 # batch tile (sublanes per grid step)
    Bp = _round_up(Bp8, TB)
    x_p = x.astype(compute_dtype)
    if Bp != B:
        x_p = jnp.pad(x_p, ((0, Bp - B), (0, 0)))

    bytes_in = (x_p.size * x_p.dtype.itemsize
                + w_slab.size * w_slab.dtype.itemsize
                + b_slab.size * b_slab.dtype.itemsize)
    cost = pl.CostEstimate(
        flops=2 * Bp * (D_IN * LANES + 3 * LANES * LANES),
        transcendentals=0,
        bytes_accessed=bytes_in + Bp * LANES * 4)

    out_padded = pl.pallas_call(
        _aefc_kernel,
        out_shape=jax.ShapeDtypeStruct((Bp, LANES), jnp.float32),
        grid=(Bp // TB,),
        in_specs=[
            pl.BlockSpec((TB, D_IN), lambda i: (i, 0)),             # x: tiled on batch
            pl.BlockSpec((W_SLAB_ROWS, LANES), lambda i: (0, 0)),   # weights: resident
            pl.BlockSpec((B_SLAB_ROWS, LANES), lambda i: (0, 0)),   # biases: resident
        ],
        out_specs=pl.BlockSpec((TB, LANES), lambda i: (i, 0)),      # lane-dense output
        compiler_params=pltpu.CompilerParams(
            dimension_semantics=("parallel",)),
        cost_estimate=cost,
    )(x_p, w_slab, b_slab)

    logits = out_padded[:B, :N_CLASSES]
    # PyTorch: return out.squeeze()  (also drops batch dim when B == 1)
    return jnp.squeeze(logits)


def init_params(key):
    """Deterministic synthetic parameters (shapes from the module __init__)."""
    ks = jax.random.split(key, 8)
    scale = 0.1

    def lin(kw, kb, fan_in, fan_out):
        w = scale * jax.random.normal(kw, (fan_in, fan_out), dtype=jnp.float32)
        b = scale * jax.random.normal(kb, (1, fan_out), dtype=jnp.float32)
        return w, b

    w1, b1 = lin(ks[0], ks[1], D_IN, ENC_HIDDEN)
    w2, b2 = lin(ks[2], ks[3], ENC_HIDDEN, LATENT)
    w3, b3 = lin(ks[4], ks[5], LATENT, CLS_HIDDEN)
    w4, b4 = lin(ks[6], ks[7], CLS_HIDDEN, N_CLASSES)
    return (w1, b1, w2, b2, w3, b3, w4, b4)


def reference(x, params):
    """Pure-JAX reference of the same forward pass."""
    (w1, b1, w2, b2, w3, b3, w4, b4) = params
    h1 = jnp.maximum(x @ w1 + b1, 0.0)
    z = h1 @ w2 + b2
    h2 = jnp.maximum(z @ w3 + b3, 0.0)
    return jnp.squeeze(h2 @ w4 + b4)


if __name__ == "__main__":
    key = jax.random.PRNGKey(0)
    kx, kp = jax.random.split(key)

    x = jax.random.normal(kx, (BATCH, D_IN), dtype=jnp.float32)
    params = init_params(kp)

    ref = reference(x, params)

    # float32 operand path
    out = jax.block_until_ready(aefc_classify(x, params))
    assert out.shape == ref.shape, (out.shape, ref.shape)
    assert jnp.allclose(out, ref, atol=1e-5, rtol=1e-5), "f32 mismatch vs reference"

    # bf16 operand path (v6e/v7x MXU-native), f32 accumulation + f32 epilogue
    out_bf16 = jax.block_until_ready(
        aefc_classify(x, params, compute_dtype=jnp.bfloat16))
    assert out_bf16.shape == ref.shape, (out_bf16.shape, ref.shape)
    assert jnp.allclose(out_bf16, ref, atol=3e-2, rtol=3e-2), "bf16 mismatch vs reference"

    print("KERNEL_OK")
</pallas_src>

<mosaic_0001>
module attributes {stable_mosaic.version = 11 : i64} {
  func.func @_aefc_kernel(%arg0: i32, %arg1: memref<8x64xf32, #tpu.memory_space<vmem>>, %arg2: memref<448x128xf32, #tpu.memory_space<vmem>>, %arg3: memref<8x128xf32, #tpu.memory_space<vmem>>, %arg4: memref<8x128xf32, #tpu.memory_space<vmem>>) attributes {dimension_semantics = [#tpu.dimension_semantics<parallel>], iteration_bounds = array<i64: 1>, scalar_prefetch = 0 : i64, scratch_operands = 0 : i64, tpu.core_type = #tpu.core_type<tc>, window_params = [{transform_indices = @transform_0, window_bounds = array<i64: 8, 64>}, {pipeline_mode = #tpu.pipeline_mode<synchronous>, transform_indices = @transform_1, window_bounds = array<i64: 448, 128>}, {pipeline_mode = #tpu.pipeline_mode<synchronous>, transform_indices = @transform_2, window_bounds = array<i64: 8, 128>}, {transform_indices = @transform_3, window_bounds = array<i64: 8, 128>}]} {
    %c0 = arith.constant 0 : index
    %c0_0 = arith.constant 0 : index
    %0 = vector.load %arg1[%c0, %c0_0] : memref<8x64xf32, #tpu.memory_space<vmem>>, vector<8x64xf32>
    %c0_1 = arith.constant 0 : index
    %c0_2 = arith.constant 0 : index
    %1 = vector.load %arg2[%c0_1, %c0_2] : memref<448x128xf32, #tpu.memory_space<vmem>>, vector<64x128xf32>
    %cst = arith.constant dense<0.000000e+00> : vector<8x128xf32>
    %2 = tpu.matmul %0, %1, %cst {dimension_numbers = #tpu.dot_dimension_numbers<[1], [0], [0], [1], [0, 0, 1, 1], [], []>} : vector<8x64xf32>, vector<64x128xf32>, vector<8x128xf32> -> vector<8x128xf32>
    %c0_3 = arith.constant 0 : index
    %c0_4 = arith.constant 0 : index
    %3 = vector.load %arg3[%c0_3, %c0_4] : memref<8x128xf32, #tpu.memory_space<vmem>>, vector<1x128xf32>
    %4 = vector.broadcast %3 : vector<1x128xf32> to vector<8x128xf32>
    %5 = arith.addf %2, %4 : vector<8x128xf32>
    %cst_5 = arith.constant 0.000000e+00 : f32
    %6 = vector.broadcast %cst_5 : f32 to vector<8x128xf32>
    %7 = arith.maximumf %5, %6 : vector<8x128xf32>
    %c64 = arith.constant 64 : index
    %c0_6 = arith.constant 0 : index
    %8 = vector.load %arg2[%c64, %c0_6] : memref<448x128xf32, #tpu.memory_space<vmem>>, vector<128x128xf32>
    %cst_7 = arith.constant dense<0.000000e+00> : vector<8x128xf32>
    %9 = tpu.matmul %7, %8, %cst_7 {dimension_numbers = #tpu.dot_dimension_numbers<[1], [0], [0], [1], [0, 0, 1, 1], [], []>} : vector<8x128xf32>, vector<128x128xf32>, vector<8x128xf32> -> vector<8x128xf32>
    %c1 = arith.constant 1 : index
    %c0_8 = arith.constant 0 : index
    %10 = vector.load %arg3[%c1, %c0_8] : memref<8x128xf32, #tpu.memory_space<vmem>>, vector<1x128xf32>
    %11 = vector.broadcast %10 : vector<1x128xf32> to vector<8x128xf32>
    %12 = arith.addf %9, %11 : vector<8x128xf32>
    %c192 = arith.constant 192 : index
    %c0_9 = arith.constant 0 : index
    %13 = vector.load %arg2[%c192, %c0_9] : memref<448x128xf32, #tpu.memory_space<vmem>>, vector<128x128xf32>
    %cst_10 = arith.constant dense<0.000000e+00> : vector<8x128xf32>
    %14 = tpu.matmul %12, %13, %cst_10 {dimension_numbers = #tpu.dot_dimension_numbers<[1], [0], [0], [1], [0, 0, 1, 1], [], []>} : vector<8x128xf32>, vector<128x128xf32>, vector<8x128xf32> -> vector<8x128xf32>
    %c2 = arith.constant 2 : index
    %c0_11 = arith.constant 0 : index
    %15 = vector.load %arg3[%c2, %c0_11] : memref<8x128xf32, #tpu.memory_space<vmem>>, vector<1x128xf32>
    %16 = vector.broadcast %15 : vector<1x128xf32> to vector<8x128xf32>
    %17 = arith.addf %14, %16 : vector<8x128xf32>
    %cst_12 = arith.constant 0.000000e+00 : f32
    %18 = vector.broadcast %cst_12 : f32 to vector<8x128xf32>
    %19 = arith.maximumf %17, %18 : vector<8x128xf32>
    %c320 = arith.constant 320 : index
    %c0_13 = arith.constant 0 : index
    %20 = vector.load %arg2[%c320, %c0_13] : memref<448x128xf32, #tpu.memory_space<vmem>>, vector<128x128xf32>
    %cst_14 = arith.constant dense<0.000000e+00> : vector<8x128xf32>
    %21 = tpu.matmul %19, %20, %cst_14 {dimension_numbers = #tpu.dot_dimension_numbers<[1], [0], [0], [1], [0, 0, 1, 1], [], []>} : vector<8x128xf32>, vector<128x128xf32>, vector<8x128xf32> -> vector<8x128xf32>
    %c3 = arith.constant 3 : index
    %c0_15 = arith.constant 0 : index
    %22 = vector.load %arg3[%c3, %c0_15] : memref<8x128xf32, #tpu.memory_space<vmem>>, vector<1x128xf32>
    %23 = vector.broadcast %22 : vector<1x128xf32> to vector<8x128xf32>
    %24 = arith.addf %21, %23 : vector<8x128xf32>
    %c0_16 = arith.constant 0 : index
    %c0_17 = arith.constant 0 : index
    %25 = vector.load %arg4[%c0_16, %c0_17] : memref<8x128xf32, #tpu.memory_space<vmem>>, vector<8x128xf32>
    tpu.vector_store %arg4[%c0_16, %c0_17], %24 {strides = array<i32>} : memref<8x128xf32, #tpu.memory_space<vmem>>, vector<8x128xf32>,
    return
  }
  func.func @transform_0(%arg0: i32) -> (i32, i32) {
    %c0_i32 = arith.constant 0 : i32
    %c0_i32_0 = arith.constant 0 : i32
    return %arg0, %c0_i32 : i32, i32
  }
  func.func @transform_1(%arg0: i32) -> (i32, i32) {
    %c0_i32 = arith.constant 0 : i32
    %c0_i32_0 = arith.constant 0 : i32
    %c0_i32_1 = arith.constant 0 : i32
    return %c0_i32, %c0_i32_0 : i32, i32
  }
  func.func @transform_2(%arg0: i32) -> (i32, i32) {
    %c0_i32 = arith.constant 0 : i32
    %c0_i32_0 = arith.constant 0 : i32
    %c0_i32_1 = arith.constant 0 : i32
    return %c0_i32, %c0_i32_0 : i32, i32
  }
  func.func @transform_3(%arg0: i32) -> (i32, i32) {
    %c0_i32 = arith.constant 0 : i32
    %c0_i32_0 = arith.constant 0 : i32
    return %arg0, %c0_i32 : i32, i32
  }
}

</mosaic_0001>

<bundles_post_ra>
// kernel: tpu_custom_call.1
= control target key start
LH: loop header
LB: loop body
LE: loop exit
PB: predicated region body
PF: predicated region fallthrough
CT: control target
= control target key end

     0   :  { %8 = vsyncpa [#allocation3], 0  ;;  %s921_s0 = inlined_call_operand.hbm [shape: f32[8,64], index: 0, kind: input, shape index: {}]   ;;  %s922_s1 = inlined_call_operand.hbm [shape: f32[448,128], index: 1, kind: input, shape index: {}]   ;;  %s923_s2 = inlined_call_operand.hbm [shape: f32[8,128], index: 2, kind: input, shape index: {}]   ;;  %s924_s3 = inlined_call_operand.hbm [shape: f32[8,128], index: 3, kind: output, shape index: {}]  }
   0x1   :  { %9 = vsyncpa [#allocation6], 0 }
   0x2   :  { %10 = vsyncpa [#allocation4], 0  ;;  %s808_s12 = smov [#allocation5]   ;;  %s714_s16 = scalar_lea.hbm %s922_s1, 7168 }
   0x3   :  { %s26_s13 = sshll.u32 %s808_s12, 4  ;;  %p715_p0 = scmp.ne.s32.totalorder %s922_s1, %s714_s16  ;;  %s27_s13 = int_to_ptr.vmem [resolvable:$true] %s26_s13 }
   0x4   :  { %p718_p1 = scmp.lt.u32.totalorder %s714_s16, %s922_s1 }
   0x6   :  { %p720_p2 = pnand %p718_p1, %p715_p0 }
   0x8   :  { %723 = shalt.err (!%p720_p2)
}
   0x9   :  { %s724_s21 = scalar_lea.vmem %s27_s13, 7168  ;;  %p729_p4 = scmp.lt.s32.totalorder %s27_s13, %s27_s13 }
   0xa   :  { %p725_p3 = scmp.ne.s32.totalorder %s27_s13, %s724_s21  ;;  %p730_p5 = scmp.lt.s32.totalorder %s724_s21, %s724_s21 }
   0xc   :  { %p731_p6 = por %p730_p5, %p729_p4 }
   0xe   :  { %p732_p7 = pnand %p731_p6, %p725_p3 }
  0x10   :  { %735 = shalt.err (!%p732_p7)
}
  0x11   :  { %s809_s22 = smov 128   ;;  %s810_s23 = smov 8  }
  0x12   :  { %32 = dma.hbm_to_vmem [thread:$0]  %s922_s1, 7168, %s27_s13, [#allocation6], %s809_s22, %s809_s22, %s810_s23  }
  0x13   :  { %s811_s26 = smov [#allocation2]   ;;  %s812_s28 = smov [#allocation7]  }
  0x14   :  { %s17_s27 = sshll.u32 %s811_s26, 4  ;;  %s39_s29 = sshll.u32 %s812_s28, 4  ;;  %s18_s27 = int_to_ptr.vmem [resolvable:$true] %s17_s27  ;;  %s40_s29 = int_to_ptr.vmem [resolvable:$true] %s39_s29 }
  0x15   :  { %s736_s5 = scalar_lea.hbm %s921_s0, 128 }
  0x16   :  { %p737_p8 = scmp.ne.s32.totalorder %s921_s0, %s736_s5  ;;  %p740_p9 = scmp.lt.u32.totalorder %s736_s5, %s921_s0 }
  0x18   :  { %p742_p10 = pnand %p740_p9, %p737_p8 }
  0x1a   :  { %745 = shalt.err (!%p742_p10)
}
  0x1b   :  { %s746_s1 = scalar_lea.vmem %s18_s27, 128  ;;  %p751_p12 = scmp.lt.s32.totalorder %s18_s27, %s18_s27 }
  0x1c   :  { %p747_p11 = scmp.ne.s32.totalorder %s18_s27, %s746_s1  ;;  %p752_p13 = scmp.lt.s32.totalorder %s746_s1, %s746_s1 }
  0x1e   :  { %p753_p0 = por %p752_p13, %p751_p12 }
  0x20   :  { %p754_p1 = pnand %p753_p0, %p747_p11 }
  0x22   :  { %757 = shalt.err (!%p754_p1)
}
  0x23   :  { %20 = dma.hbm_to_vmem [thread:$0]  %s921_s0, 128, %s18_s27, [#allocation3]  }
  0x24   :  { %s758_s14 = scalar_lea.hbm %s923_s2, 128 }
  0x25   :  { %p759_p2 = scmp.ne.s32.totalorder %s923_s2, %s758_s14  ;;  %p762_p3 = scmp.lt.u32.totalorder %s758_s14, %s923_s2 }
  0x27   :  { %p764_p4 = pnand %p762_p3, %p759_p2 }
  0x29   :  { %767 = shalt.err (!%p764_p4)
}
  0x2a   :  { %s768_s19 = scalar_lea.vmem %s40_s29, 128  ;;  %p773_p6 = scmp.lt.s32.totalorder %s40_s29, %s40_s29 }
  0x2b   :  { %p769_p5 = scmp.ne.s32.totalorder %s40_s29, %s768_s19  ;;  %p774_p7 = scmp.lt.s32.totalorder %s768_s19, %s768_s19 }
  0x2d   :  { %p775_p8 = por %p774_p7, %p773_p6 }
  0x2f   :  { %p776_p9 = pnand %p775_p8, %p769_p5 }
  0x31   :  { %779 = shalt.err (!%p776_p9)
}
  0x32   :  { %42 = dma.hbm_to_vmem [thread:$0]  %s923_s2, 128, %s40_s29, [#allocation6]  }
  0x33   :  { %802 = dma.done.wait [#allocation3], 128  }
  0x34   :  { %803 = vsyncadd [#allocation3], 4294967168 }
  0x35   :  { %804 = dma.done.wait [#allocation6], 7296  }
  0x36   :  { %805 = vsyncadd [#allocation6], 4294960000  ;;  %v813_v0 = vmov 0.0|0.0   ;;  %vm814_vm0 = vmmov 0   ;;  %v815_v1 = vmov 0.0   ;;  %v53_v2 = vld [vmem:[#allocation5] sm:$0xff] }
  0x37   :  { %621 = vmatprep.subr.bf16.mxu0 %v813_v0  ;;  %513 = vmatprep.mubr.msk.f32.mxu0 %vm814_vm0, %v815_v1  ;;  %v54_v3 = vld [vmem:[#allocation5 + $0x8] sm:$0xff]  ;;  %v55_v4 = vld [vmem:[#allocation5 + $0x10] sm:$0xff]  ;;  %v56_v6 = vld [vmem:[#allocation5 + $0x18] sm:$0xff]  ;;  %vm66_vm1 = vcmask 523264   ;;  %s816_s2 = smov [#allocation8]  }
  0x38   :  { %633 = vmatprep.subr.bf16.mxu1 %v813_v0  ;;  %548 = vmatprep.mubr.msk.f32.mxu1 %vm814_vm0, %v815_v1  ;;  %v622_v5 = vpack.c.bf16 %v54_v3, %v53_v2  ;;  %v625_v7 = vpack.c.bf16 %v56_v6, %v55_v4  ;;  %v141_v8 = vld [vmem:[#allocation5 + $0x40] sm:$0xff]  ;;  %v142_v9 = vld [vmem:[#allocation5 + $0x48] sm:$0xff]  ;;  %v143_v10 = vld [vmem:[#allocation5 + $0x50] sm:$0xff]  ;;  %s422_s21 = sshll.u32 %s816_s2, 4  ;;  %s423_s21 = int_to_ptr.vmem [resolvable:$true] %s422_s21 }
  0x39   :  { %v57_v11 = vld [vmem:[#allocation5 + $0x20] sm:$0xff]  ;;  %v58_v12 = vld [vmem:[#allocation5 + $0x28] sm:$0xff]  ;;  %v634_v13 = vpack.c.bf16 %v142_v9, %v141_v8  ;;  %v144_v14 = vld [vmem:[#allocation5 + $0x58] sm:$0xff]  ;;  %s780_s22 = scalar_lea.vmem %s423_s21, 128  ;;  %p785_p11 = scmp.lt.s32.totalorder %s423_s21, %s423_s21 }
  0x3a   :  { %623 = vmatpush3.bf16.msra.mxu0 %v622_v5  ;;  %v637_v15 = vpack.c.bf16 %v144_v14, %v143_v10  ;;  %v628_v16 = vpack.c.bf16 %v58_v12, %v57_v11  ;;  %v145_v17 = vld [vmem:[#allocation5 + $0x60] sm:$0xff]  ;;  %v146_v18 = vld [vmem:[#allocation5 + $0x68] sm:$0xff]  ;;  %v59_v19 = vld [vmem:[#allocation5 + $0x30] sm:$0xff]  ;;  %p781_p10 = scmp.ne.s32.totalorder %s423_s21, %s780_s22  ;;  %p786_p12 = scmp.lt.s32.totalorder %s780_s22, %s780_s22 }
  0x3b   :  { %624 = vmatprep.subr.bf16.mxu0 %v813_v0  ;;  %635 = vmatpush3.bf16.msra.mxu1 %v634_v13  ;;  %v60_v20 = vld [vmem:[#allocation5 + $0x38] sm:$0xff]  ;;  %v640_v21 = vpack.c.bf16 %v146_v18, %v145_v17  ;;  %v147_v23 = vld [vmem:[#allocation5 + $0x70] sm:$0xff]  ;;  %v149_v27 = vld [vmem:[#allocation5 + $0x80] sm:$0xff] }
  0x3c   :  { %636 = vmatprep.subr.bf16.mxu1 %v813_v0  ;;  %v631_v22 = vpack.c.bf16 %v60_v20, %v59_v19  ;;  %v148_v24 = vld [vmem:[#allocation5 + $0x78] sm:$0xff]  ;;  %v150_v28 = vld [vmem:[#allocation5 + $0x88] sm:$0xff]  ;;  %v151_v30 = vld [vmem:[#allocation5 + $0x90] sm:$0xff]  ;;  %p787_p13 = por %p786_p12, %p785_p11 }
  0x3d   :  { %v643_v25 = vpack.c.bf16 %v148_v24, %v147_v23  ;;  %v52_v26 = vld [vmem:[#allocation2] sm:$0xff]  ;;  %v646_v29 = vpack.c.bf16 %v150_v28, %v149_v27  ;;  %v153_v33 = vld [vmem:[#allocation5 + $0xa0] sm:$0xff]  ;;  %v154_v34 = vld [vmem:[#allocation5 + $0xa8] sm:$0xff] }
  0x3e   :  { %626 = vmatpush3.bf16.msra.mxu0 %v625_v7  ;;  %v152_v31 = vld [vmem:[#allocation5 + $0x98] sm:$0xff]  ;;  %v652_v35 = vpack.c.bf16 %v154_v34, %v153_v33  ;;  %v155_v36 = vld [vmem:[#allocation5 + $0xb0] sm:$0xff]  ;;  %v232_v39 = vld [vmem:[#allocation5 + $0xc0] sm:$0xff]  ;;  %p788_p0 = pnand %p787_p13, %p781_p10 }
  0x3f   :  { %627 = vmatprep.subr.bf16.mxu0 %v813_v0  ;;  %638 = vmatpush3.bf16.msra.mxu1 %v637_v15  ;;  %v649_v32 = vpack.c.bf16 %v152_v31, %v151_v30  ;;  %v156_v37 = vld [vmem:[#allocation5 + $0xb8] sm:$0xff]  ;;  %v233_v40 = vld [vmem:[#allocation5 + $0xc8] sm:$0xff]  ;;  %v234_v41 = vld [vmem:[#allocation5 + $0xd0] sm:$0xff] }
  0x40   :  { %639 = vmatprep.subr.bf16.mxu1 %v813_v0  ;;  %v655_v38 = vpack.c.bf16 %v156_v37, %v155_v36  ;;  %v658_v42 = vpack.c.bf16 %v233_v40, %v232_v39  ;;  %v235_v43 = vld [vmem:[#allocation5 + $0xd8] sm:$0xff]  ;;  %v236_v45 = vld [vmem:[#allocation5 + $0xe0] sm:$0xff]  ;;  %v237_v46 = vld [vmem:[#allocation5 + $0xe8] sm:$0xff] }
  0x41   :  { %v661_v44 = vpack.c.bf16 %v235_v43, %v234_v41  ;;  %v664_v47 = vpack.c.bf16 %v237_v46, %v236_v45  ;;  %v238_v48 = vld [vmem:[#allocation5 + $0xf0] sm:$0xff]  ;;  %v239_v49 = vld [vmem:[#allocation5 + $0xf8] sm:$0xff]  ;;  %v240_v51 = vld [vmem:[#allocation5 + $0x100] sm:$0xff] }
  0x42   :  { %629 = vmatpush3.bf16.msra.mxu0 %v628_v16  ;;  %v667_v50 = vpack.c.bf16 %v239_v49, %v238_v48  ;;  %v241_v52 = vld [vmem:[#allocation5 + $0x108] sm:$0xff]  ;;  %v242_v54 = vld [vmem:[#allocation5 + $0x110] sm:$0xff]  ;;  %v243_v55 = vld [vmem:[#allocation5 + $0x118] sm:$0xff] }
  0x43   :  { %630 = vmatprep.subr.bf16.mxu0 %v813_v0  ;;  %641 = vmatpush3.bf16.msra.mxu1 %v640_v21  ;;  %v670_v53 = vpack.c.bf16 %v241_v52, %v240_v51  ;;  %v673_v56 = vpack.c.bf16 %v243_v55, %v242_v54  ;;  %v244_v57 = vld [vmem:[#allocation5 + $0x120] sm:$0xff]  ;;  %v245_v58 = vld [vmem:[#allocation5 + $0x128] sm:$0xff]  ;;  %v246_v3 = vld [vmem:[#allocation5 + $0x130] sm:$0xff] }
  0x44   :  { %642 = vmatprep.subr.bf16.mxu1 %v813_v0  ;;  %v676_v59 = vpack.c.bf16 %v245_v58, %v244_v57  ;;  %v432_v60 = vld [vmem:[#allocation7] ss:$0 sm:$0xff]  ;;  %v247_v4 = vld [vmem:[#allocation5 + $0x138] sm:$0xff]  ;;  %v325_v7 = vld [vmem:[#allocation5 + $0x148] sm:$0xff] }
  0x45   :  { %v679_v5 = vpack.c.bf16 %v247_v4, %v246_v3  ;;  %v324_v6 = vld [vmem:[#allocation5 + $0x140] sm:$0xff]  ;;  %v326_v8 = vld [vmem:[#allocation5 + $0x150] sm:$0xff]  ;;  %v327_v10 = vld [vmem:[#allocation5 + $0x158] sm:$0xff] }
  0x46   :  { %632 = vmatpush3.bf16.msra.mxu0 %v631_v22  ;;  %v682_v9 = vpack.c.bf16 %v325_v7, %v324_v6  ;;  %v685_v11 = vpack.c.bf16 %v327_v10, %v326_v8  ;;  %v328_v12 = vld [vmem:[#allocation5 + $0x160] sm:$0xff]  ;;  %v329_v13 = vld [vmem:[#allocation5 + $0x168] sm:$0xff]  ;;  %v331_v15 = vld [vmem:[#allocation5 + $0x178] sm:$0xff] }
  0x47   :  { %657 = vmatprep.subr.bf16.mxu0 %v813_v0  ;;  %644 = vmatpush3.bf16.msra.mxu1 %v643_v25  ;;  %v688_v14 = vpack.c.bf16 %v329_v13, %v328_v12  ;;  %v332_v17 = vld [vmem:[#allocation5 + $0x180] sm:$0xff]  ;;  %v333_v18 = vld [vmem:[#allocation5 + $0x188] sm:$0xff]  ;;  %v334_v20 = vld [vmem:[#allocation5 + $0x190] sm:$0xff] }
  0x48   :  { %645 = vmatprep.subr.bf16.mxu1 %v813_v0  ;;  %v694_v19 = vpack.c.bf16 %v333_v18, %v332_v17  ;;  %v335_v21 = vld [vmem:[#allocation5 + $0x198] sm:$0xff]  ;;  %v336_v23 = vld [vmem:[#allocation5 + $0x1a0] sm:$0xff]  ;;  %v337_v24 = vld [vmem:[#allocation5 + $0x1a8] sm:$0xff] }
  0x49   :  { %514 = vmatmul.mubr.msk.f32.vlgmr.msra.gmra.mrb[0].mxu0 %vm66_vm1, %v52_v26  ;;  %v697_v22 = vpack.c.bf16 %v335_v21, %v334_v20  ;;  %v700_v25 = vpack.c.bf16 %v337_v24, %v336_v23  ;;  %v434_v26 = vld [vmem:[#allocation7 + $0x1] ss:$0 sm:$0xff]  ;;  %v338_v30 = vld [vmem:[#allocation5 + $0x1b0] sm:$0xff]  ;;  %v339_v31 = vld [vmem:[#allocation5 + $0x1b8] sm:$0xff] }
  0x4a   :  { %583 = vmatprep.mubr.msk.f32.mxu0 %vm814_vm0, %v815_v1  ;;  %659 = vmatpush3.bf16.msra.mxu0 %v658_v42  ;;  %v435_v33 = vld [vmem:[#allocation7 + $0x2] ss:$0 sm:$0xff] }
  0x4b   :  { %647 = vmatpush3.bf16.msra.mxu1 %v646_v29  ;;  %660 = vmatprep.subr.bf16.mxu0 %v813_v0 }
  0x4c   :  { %648 = vmatprep.subr.bf16.mxu1 %v813_v0 }
  0x4e   :  { %662 = vmatpush3.bf16.msra.mxu0 %v661_v44 }
  0x4f   :  { %650 = vmatpush3.bf16.msra.mxu1 %v649_v32  ;;  %663 = vmatprep.subr.bf16.mxu0 %v813_v0  ;;  %v703_v32 = vpack.c.bf16 %v339_v31, %v338_v30 }
  0x50   :  { %651 = vmatprep.subr.bf16.mxu1 %v813_v0 }
  0x52   :  { %665 = vmatpush3.bf16.msra.mxu0 %v664_v47 }
  0x53   :  { %653 = vmatpush3.bf16.msra.mxu1 %v652_v35  ;;  %666 = vmatprep.subr.bf16.mxu0 %v813_v0 }
  0x54   :  { %654 = vmatprep.subr.bf16.mxu1 %v813_v0 }
  0x56   :  { %668 = vmatpush3.bf16.msra.mxu0 %v667_v50 }
  0x57   :  { %656 = vmatpush3.bf16.msra.mxu1 %v655_v38  ;;  %669 = vmatprep.subr.bf16.mxu0 %v813_v0  ;;  %v436_v38 = vld [vmem:[#allocation7 + $0x3] ss:$0 sm:$0xff] }
  0x58   :  { %681 = vmatprep.subr.bf16.mxu1 %v813_v0 }
  0x5a   :  { %671 = vmatpush3.bf16.msra.mxu0 %v670_v53 }
  0x5b   :  { %672 = vmatprep.subr.bf16.mxu0 %v813_v0 }
  0x5e   :  { %674 = vmatpush3.bf16.msra.mxu0 %v673_v56 }
  0x5f   :  { %675 = vmatprep.subr.bf16.mxu0 %v813_v0 }
  0x62   :  { %677 = vmatpush3.bf16.msra.mxu0 %v676_v59 }
  0x63   :  { %678 = vmatprep.subr.bf16.mxu0 %v813_v0 }
  0x66   :  { %680 = vmatpush3.bf16.msra.mxu0 %v679_v5 }
 0x11c   :  { %v136_v61 = vpop.f32.mrb[0].mxu0 }
 0x11d   :  { %v137_v62 = vadd.f32 %v432_v60, %v136_v61  ;;  %v515_v63 = vpop.f32.mrb[1].mxu0 }
 0x11f   :  { %v140_v2 = vmax.f32 %v137_v62, 0.0 }
 0x121   :  { %549 = vmatmul.mubr.f32.vlgmr.msra.gmra.mrb[0].mxu1 %v140_v2 }
 0x122   :  { %618 = vmatprep.mubr.msk.f32.mxu1 %vm814_vm0, %v815_v1  ;;  %683 = vmatpush3.bf16.msra.mxu1 %v682_v9  ;;  %v330_v1 = vld [vmem:[#allocation5 + $0x170] sm:$0xff] }
 0x123   :  { %684 = vmatprep.subr.bf16.mxu1 %v813_v0  ;;  %v691_v16 = vpack.c.bf16 %v331_v15, %v330_v1 }
 0x126   :  { %686 = vmatpush3.bf16.msra.mxu1 %v685_v11 }
 0x127   :  { %687 = vmatprep.subr.bf16.mxu1 %v813_v0 }
 0x12a   :  { %689 = vmatpush3.bf16.msra.mxu1 %v688_v14 }
 0x12b   :  { %690 = vmatprep.subr.bf16.mxu1 %v813_v0 }
 0x12e   :  { %692 = vmatpush3.bf16.msra.mxu1 %v691_v16 }
 0x12f   :  { %693 = vmatprep.subr.bf16.mxu1 %v813_v0 }
 0x132   :  { %695 = vmatpush3.bf16.msra.mxu1 %v694_v19 }
 0x133   :  { %696 = vmatprep.subr.bf16.mxu1 %v813_v0 }
 0x136   :  { %698 = vmatpush3.bf16.msra.mxu1 %v697_v22 }
 0x137   :  { %699 = vmatprep.subr.bf16.mxu1 %v813_v0 }
 0x13a   :  { %701 = vmatpush3.bf16.msra.mxu1 %v700_v25 }
 0x13b   :  { %702 = vmatprep.subr.bf16.mxu1 %v813_v0 }
 0x13e   :  { %704 = vmatpush3.bf16.msra.mxu1 %v703_v32 }
 0x1f4   :  { %v228_v27 = vpop.f32.mrb[0].mxu1 }
 0x1f5   :  { %v229_v28 = vadd.f32 %v434_v26, %v228_v27  ;;  %v550_v29 = vpop.f32.mrb[1].mxu1 }
 0x1f7   :  { %584 = vmatmul.mubr.f32.vlgmr.msra.gmra.mrb[2].mxu0 %v229_v28 }
 0x2ca   :  { %v319_v34 = vpop.f32.mrb[2].mxu0 }
 0x2cb   :  { %v320_v35 = vadd.f32 %v435_v33, %v319_v34  ;;  %v585_v36 = vpop.f32.mrb[3].mxu0 }
 0x2cd   :  { %v323_v37 = vmax.f32 %v320_v35, 0.0 }
 0x2cf   :  { %619 = vmatmul.mubr.f32.vlgmr.msra.gmra.mrb[2].mxu1 %v323_v37 }
 0x3a2   :  { %v411_v39 = vpop.f32.mrb[2].mxu1 }
 0x3a3   :  { %v412_v0 = vadd.f32 %v436_v38, %v411_v39  ;;  %v620_v40 = vpop.f32.mrb[3].mxu1 }
 0x3a5   :  { %415 = vst [vmem:[#allocation8] sm:$0xff] %v412_v0 }
 0x3a6   :  { %791 = shalt.err (!%p788_p0)
}
 0x3a7   :  { %s792_s25 = scalar_lea.hbm %s924_s3, 128 }
 0x3a8   :  { %p793_p1 = scmp.ne.s32.totalorder %s924_s3, %s792_s25  ;;  %p796_p2 = scmp.lt.u32.totalorder %s792_s25, %s924_s3 }
 0x3aa   :  { %p798_p3 = pnand %p796_p2, %p793_p1 }
 0x3ac   :  { %801 = shalt.err (!%p798_p3)
}
 0x3ad   :  { %425 = dma.vmem_to_hbm [thread:$0]  %s423_s21, 128, %s924_s3, [#allocation4]  }
 0x3ae   :  { %806 = dma.done.wait [#allocation4], 128  }
 0x3af   :  { %807 = vsyncadd [#allocation4], 4294967168 }
 0x3b0   :  { %429 = vsyncpa [#allocation3], 1 }
 0x3b1   :  { %430 = vsyncpa [#allocation6], 1 }
 0x3b2   :  { %431 = vsyncpa [#allocation4], 1 }

</bundles_post_ra>
